<compile_context>
chip_gen: v5e
topology: v5e:2x2
jax: 0.10.0
libtpu: 0.0.40
codegen_flags: <defaults>
</compile_context>

<pallas_src>
import numpy as np
import jax
import jax.numpy as jnp
from jax import lax
from jax.experimental import pallas as pl
from jax.experimental.pallas import tpu as pltpu


# --------------------------------------------------------------------------
# Kernel
# --------------------------------------------------------------------------
def _scatter_kernel(counts_ref, xT_ref, loc_ref, out_ref):
    # counts_ref: (nb*nh,) int32 in SMEM (scalar prefetch) - entities per tile
    # xT_ref:     (bt, N, M)   entity features, transposed
    # loc_ref:    (bt, 1, M)   int32 flattened locations (lane-dense, -1 = drop)
    # out_ref:    (bt, N, THW)
    bi = pl.program_id(0)
    hi = pl.program_id(1)
    nh = pl.num_programs(1)
    cnt = counts_ref[bi * nh + hi]

    @pl.when(cnt == 0)
    def _():
        # No entity lands in this spatial tile: pure zero writeback.
        out_ref[...] = jnp.zeros_like(out_ref)

    @pl.when(cnt > 0)
    def _():
        bt, _, thw = out_ref.shape
        m = loc_ref.shape[-1]
        # Absolute flattened spatial positions of this tile, varying along
        # sublanes (standard 2-D iota mask pattern); built in-kernel, no
        # separate "pos" input stream.
        pos2d = hi * thw + lax.broadcasted_iota(jnp.int32, (thw, m), 0)

        def body(b, carry):
            loc_row = loc_ref[b]                                  # (1, M)
            # One-hot for this batch + spatial tile only, in x's dtype
            # (bf16 MXU fast path when x is bf16). Sentinel / out-of-range
            # locations give an all-zero column.
            onehot = (pos2d == loc_row).astype(xT_ref.dtype)      # (THW, M)
            # (N, M) @ (THW, M)^T on the MXU with f32 accumulation
            # (same transposed-RHS contraction as flash-attention q @ k^T).
            res = lax.dot_general(
                xT_ref[b], onehot,
                dimension_numbers=(((1,), (1,)), ((), ())),
                preferred_element_type=jnp.float32)               # (N, THW)
            out_ref[b] = res.astype(out_ref.dtype)
            return carry

        lax.fori_loop(0, bt, body, 0, unroll=True)


# --------------------------------------------------------------------------
# Tile selection / VMEM budgeting
# --------------------------------------------------------------------------
def _round_up(x, m):
    return ((x + m - 1) // m) * m


def _physical_vmem_bytes():
    """Best-effort per-TensorCore VMEM capacity (generation aware)."""
    kind = ""
    try:
        kind = jax.devices()[0].device_kind.lower()
    except Exception:
        pass
    cap = 0
    try:
        cap = int(pltpu.get_tpu_info().vmem_capacity_bytes)
    except Exception:
        cap = 0
    if cap < (16 << 20) or cap > (512 << 20):
        # Fallback: 128 MiB on v4/v5/v6, conservative 64 MiB otherwise.
        cap = (128 << 20) if any(t in kind for t in ("v4", "v5", "v6")) else (64 << 20)
    if "7" in kind:  # v7x: 64 MiB per TensorCore regardless of what was reported
        cap = min(cap, 64 << 20)
    return cap


def _select_tiles(B, M, N, HW, x_it, out_it, budget, max_lane_tile):
    """Pick (thw, bt) so the whole per-step working set fits the VMEM budget."""
    hw_full = _round_up(HW, 128)          # lane-dense even for odd spatial sizes
    m_lane = _round_up(M, 128)
    n_sub = _round_up(N, 8)

    def fit_bt(thw):
        # Live per-batch-iteration intermediates (not double-buffered):
        fixed = (thw * m_lane * max(x_it, 4)      # one-hot (+ int32 iota/compare)
                 + n_sub * thw * 4                # f32 dot result
                 + (256 << 10))                   # misc headroom
        # Double-buffered per-batch blocks (input, loc, output):
        per_bt = 2 * (n_sub * m_lane * x_it       # xT block
                      + 8 * m_lane * 4            # loc block (sublane-padded i32)
                      + n_sub * thw * out_it)     # out block
        if budget <= fixed:
            return 0
        return min(min(B, 32), (budget - fixed) // per_bt)

    thw = min(hw_full, max(128, _round_up(max_lane_tile, 128)))
    while fit_bt(thw) < 1 and thw > 128:
        thw = max(128, _round_up(thw // 2, 128) if thw // 2 >= 128 else 128)
        if thw >= hw_full:  # safety against non-shrinking rounding
            thw = max(128, hw_full // 2 // 128 * 128 or 128)
            break
    bt = max(1, int(fit_bt(thw)))
    return thw, bt


# --------------------------------------------------------------------------
# Wrapper
# --------------------------------------------------------------------------
def scatter_connection(x, spatial_size, location, scatter_type="add",
                       *, max_lane_tile=2048):
    """x: (B, M, N) float, location: (B, M, 2) int (y, x) -> (B, N, H, W)."""
    assert scatter_type in ("add", "cover")
    B, M, N = x.shape
    H, W = spatial_size
    HW = H * W

    # Flatten (y, x) -> y*W + x; drop anything out of range on EITHER axis.
    y = location[..., 0].astype(jnp.int32)
    xx = location[..., 1].astype(jnp.int32)
    valid = (y >= 0) & (y < H) & (xx >= 0) & (xx < W)
    loc_flat = jnp.where(valid, y * W + xx, -1)                    # (B, M)

    if scatter_type == "cover":
        # Deterministic last-write-wins: keep only the last occurrence of each
        # location. O(B*M*logM) stable sort (ties keep entity order), instead
        # of the old O(B*M^2) pairwise mask.
        order = jnp.argsort(loc_flat, axis=1, stable=True)         # (B, M)
        loc_sorted = jnp.take_along_axis(loc_flat, order, axis=1)
        not_last = jnp.concatenate(
            [loc_sorted[:, :-1] == loc_sorted[:, 1:],
             jnp.zeros((B, 1), dtype=bool)], axis=1)               # sorted order
        drop = jnp.zeros((B, M), dtype=bool).at[
            jnp.arange(B)[:, None], order].set(not_last)           # orig order
        loc_flat = jnp.where(drop, -1, loc_flat)

    # --- tile selection against a generation-aware VMEM budget --------------
    cap = _physical_vmem_bytes()
    budget = int(cap * 0.55)
    vmem_limit = int(cap * 0.75)
    x_it = jnp.dtype(x.dtype).itemsize
    thw, bt = _select_tiles(B, M, N, HW, x_it, x_it, budget, max_lane_tile)

    hw_pad = pl.cdiv(HW, thw) * thw
    b_pad = pl.cdiv(B, bt) * bt
    nb, nh = b_pad // bt, hw_pad // thw

    # Megacore: guarantee >= 2 grid steps along a 'parallel' axis (v7x = 2 TCs).
    if nb == 1 and nh == 1:
        if B > 1:
            bt = pl.cdiv(B, 2)
        elif HW > 128:
            thw = max(128, _round_up(pl.cdiv(HW, 2), 128))
        hw_pad = pl.cdiv(HW, thw) * thw
        b_pad = pl.cdiv(B, bt) * bt
        nb, nh = b_pad // bt, hw_pad // thw

    # Pre-transpose so the MXU contraction is over the last LHS dim.
    xT = jnp.swapaxes(x, 1, 2)                                     # (B, N, M)
    if b_pad != B:
        xT = jnp.pad(xT, ((0, b_pad - B), (0, 0), (0, 0)))
        loc_flat = jnp.pad(loc_flat, ((0, b_pad - B), (0, 0)),
                           constant_values=-1)
    loc_lane = loc_flat[:, None, :]                                # (b_pad, 1, M)

    # Occupancy counts per (batch block, HW tile): lets the kernel skip
    # entity-free spatial tiles entirely.
    tile_of = jnp.where(loc_flat >= 0, loc_flat // thw, -1)        # (b_pad, M)
    hit = tile_of[:, :, None] == jnp.arange(nh, dtype=jnp.int32)[None, None, :]
    counts = hit.sum(axis=1).astype(jnp.int32)                     # (b_pad, nh)
    counts = counts.reshape(nb, bt, nh).sum(axis=1).reshape(-1)    # (nb*nh,)
    counts = counts.astype(jnp.int32)

    # NOTE: for very small N an extra win is to flatten (B, N) into the
    # leading output dim (sublane-dense stores); skipped here for simplicity.
    out = pl.pallas_call(
        _scatter_kernel,
        out_shape=jax.ShapeDtypeStruct((b_pad, N, hw_pad), x.dtype),
        grid_spec=pltpu.PrefetchScalarGridSpec(
            num_scalar_prefetch=1,
            grid=(nb, nh),                 # HW-tile axis last: xT/loc not re-DMA'd
            in_specs=[
                pl.BlockSpec((bt, N, M), lambda bi, hi, cnts: (bi, 0, 0)),
                pl.BlockSpec((bt, 1, M), lambda bi, hi, cnts: (bi, 0, 0)),
            ],
            out_specs=pl.BlockSpec((bt, N, thw), lambda bi, hi, cnts: (bi, 0, hi)),
        ),
        compiler_params=pltpu.CompilerParams(
            dimension_semantics=("parallel", "parallel"),
            vmem_limit_bytes=vmem_limit),
    )(counts, xT, loc_lane)

    out = out[:B, :, :HW]
    return out.reshape(B, N, H, W)


# --------------------------------------------------------------------------
# Reference + self-test
# --------------------------------------------------------------------------
def _reference(x, spatial_size, location, scatter_type):
    x = np.asarray(x)
    location = np.asarray(location)
    B, M, N = x.shape
    H, W = spatial_size
    out = np.zeros((B, N, H, W), dtype=np.float32)
    for b in range(B):
        for m in range(M):
            yy, xx = int(location[b, m, 0]), int(location[b, m, 1])
            if scatter_type == "add":
                out[b, :, yy, xx] += x[b, m, :]
            else:  # cover: last write wins
                out[b, :, yy, xx] = x[b, m, :]
    return out


if __name__ == "__main__":
    # ScatterConnection has no trainable parameters; only scatter_type config.
    B, M, N = 2, 8, 4
    H, W = 16, 16
    spatial_size = (H, W)

    key = jax.random.PRNGKey(0)
    kx, ky, kw, k2, k3 = jax.random.split(key, 5)
    x = jax.random.normal(kx, (B, M, N), dtype=jnp.float32)
    ys = jax.random.randint(ky, (B, M, 1), 0, H, dtype=jnp.int32)
    xs = jax.random.randint(kw, (B, M, 1), 0, W, dtype=jnp.int32)
    location = jnp.concatenate([ys, xs], axis=-1)
    # Force a duplicate location to exercise add/cover semantics.
    location = location.at[0, 1].set(location[0, 0])

    ok = True
    # 1) both scatter modes, single-tile and tiled-HW paths
    for mode in ("add", "cover"):
        ref = _reference(x, spatial_size, location, mode)
        for lt in (2048, 128):
            out = jax.block_until_ready(
                scatter_connection(x, spatial_size, location,
                                   scatter_type=mode, max_lane_tile=lt))
            if not np.allclose(np.asarray(out), ref, atol=1e-5, rtol=1e-5):
                ok = False
                print(f"mismatch: mode={mode}, max_lane_tile={lt}")

    # 2) odd spatial size (exercises the 128-lane output padding)
    H2, W2 = 13, 11
    ys2 = jax.random.randint(k2, (B, M, 1), 0, H2, dtype=jnp.int32)
    xs2 = jax.random.randint(k3, (B, M, 1), 0, W2, dtype=jnp.int32)
    loc2 = jnp.concatenate([ys2, xs2], axis=-1)
    ref2 = _reference(x, (H2, W2), loc2, "add")
    out2 = jax.block_until_ready(
        scatter_connection(x, (H2, W2), loc2, scatter_type="add"))
    if not np.allclose(np.asarray(out2), ref2, atol=1e-5, rtol=1e-5):
        ok = False
        print("mismatch: odd spatial size")

    # 3) tiled-HW path with an entity-free spatial tile (occupancy-skip branch):
    #    all entities land in the first 8 rows -> second 128-lane tile is empty.
    ys3 = jax.random.randint(ky, (B, M, 1), 0, 8, dtype=jnp.int32)
    loc3 = jnp.concatenate([ys3, xs], axis=-1)
    ref3 = _reference(x, spatial_size, loc3, "add")
    out3 = jax.block_until_ready(
        scatter_connection(x, spatial_size, loc3, scatter_type="add",
                           max_lane_tile=128))
    if not np.allclose(np.asarray(out3), ref3, atol=1e-5, rtol=1e-5):
        ok = False
        print("mismatch: occupancy-skip path")

    if ok:
        print("KERNEL_OK")
</pallas_src>

<mosaic_0001>
module attributes {stable_mosaic.version = 11 : i64} {
  func.func @_scatter_kernel(%arg0: i32, %arg1: i32, %arg2: memref<2xi32, #tpu.memory_space<smem>>, %arg3: memref<1x4x8xf32, #tpu.memory_space<vmem>>, %arg4: memref<1x1x8xi32, #tpu.memory_space<vmem>>, %arg5: memref<1x4x256xf32, #tpu.memory_space<vmem>>) attributes {dimension_semantics = [#tpu.dimension_semantics<parallel>, #tpu.dimension_semantics<parallel>], iteration_bounds = array<i64: 2, 1>, scalar_prefetch = 1 : i64, scratch_operands = 0 : i64, tpu.core_type = #tpu.core_type<tc>, window_params = [{transform_indices = @transform_0, window_bounds = array<i64: 1, 4, 8>}, {transform_indices = @transform_1, window_bounds = array<i64: 1, 1, 8>}, {transform_indices = @transform_2, window_bounds = array<i64: 1, 4, 256>}]} {
    %c1_i32 = arith.constant 1 : i32
    %0 = arith.muli %arg0, %c1_i32 : i32
    %1 = arith.addi %0, %arg1 : i32
    %2 = arith.index_cast %1 : i32 to index
    %3 = memref.load %arg2[%2] : memref<2xi32, #tpu.memory_space<smem>>
    %c0_i32 = arith.constant 0 : i32
    %4 = arith.cmpi eq, %3, %c0_i32 : i32
    %5 = arith.extui %4 : i1 to i32
    %c0_i32_0 = arith.constant 0 : i32
    %6 = arith.cmpi ne, %5, %c0_i32_0 : i32
    scf.if %6 {
      %cst = arith.constant 0.000000e+00 : f32
      %10 = vector.broadcast %cst : f32 to vector<1x4x256xf32>
      %c0 = arith.constant 0 : index
      %c0_3 = arith.constant 0 : index
      %c0_4 = arith.constant 0 : index
      %11 = vector.load %arg5[%c0, %c0_3, %c0_4] : memref<1x4x256xf32, #tpu.memory_space<vmem>>, vector<1x4x256xf32>
      tpu.vector_store %arg5[%c0, %c0_3, %c0_4], %10 {strides = array<i32>} : memref<1x4x256xf32, #tpu.memory_space<vmem>>, vector<1x4x256xf32>,
    } else {
    }
    %c0_i32_1 = arith.constant 0 : i32
    %7 = arith.cmpi sgt, %3, %c0_i32_1 : i32
    %8 = arith.extui %7 : i1 to i32
    %c0_i32_2 = arith.constant 0 : i32
    %9 = arith.cmpi ne, %8, %c0_i32_2 : i32
    scf.if %9 {
      %c256_i32 = arith.constant 256 : i32
      %10 = arith.muli %arg1, %c256_i32 : i32
      %11 = tpu.iota {dimensions = array<i32: 0>} : vector<256x8xi32>
      %12 = vector.broadcast %10 : i32 to vector<256x8xi32>
      %13 = arith.addi %12, %11 : vector<256x8xi32>
      %c0_i32_3 = arith.constant 0 : i32
      %14 = arith.index_cast %c0_i32_3 : i32 to index
      %c0 = arith.constant 0 : index
      %c0_4 = arith.constant 0 : index
      %15 = vector.load %arg4[%14, %c0, %c0_4] : memref<1x1x8xi32, #tpu.memory_space<vmem>>, vector<1x1x8xi32>
      %16 = vector.shape_cast %15 : vector<1x1x8xi32> to vector<1x8xi32>
      %17 = vector.broadcast %16 : vector<1x8xi32> to vector<256x8xi32>
      %18 = arith.cmpi eq, %13, %17 : vector<256x8xi32>
      %19 = arith.extui %18 : vector<256x8xi1> to vector<256x8xi32>
      %20 = arith.sitofp %19 : vector<256x8xi32> to vector<256x8xf32>
      %21 = arith.index_cast %c0_i32_3 : i32 to index
      %c0_5 = arith.constant 0 : index
      %c0_6 = arith.constant 0 : index
      %22 = vector.load %arg3[%21, %c0_5, %c0_6] : memref<1x4x8xf32, #tpu.memory_space<vmem>>, vector<1x4x8xf32>
      %23 = vector.shape_cast %22 : vector<1x4x8xf32> to vector<4x8xf32>
      %cst = arith.constant dense<0.000000e+00> : vector<4x256xf32>
      %24 = tpu.matmul %23, %20, %cst {dimension_numbers = #tpu.dot_dimension_numbers<[1], [1], [0], [0], [0, 0, 1, 0], [], []>} : vector<4x8xf32>, vector<256x8xf32>, vector<4x256xf32> -> vector<4x256xf32>
      %25 = arith.index_cast %c0_i32_3 : i32 to index
      %c0_7 = arith.constant 0 : index
      %c0_8 = arith.constant 0 : index
      %26 = vector.load %arg5[%25, %c0_7, %c0_8] : memref<1x4x256xf32, #tpu.memory_space<vmem>>, vector<1x4x256xf32>
      %27 = vector.shape_cast %26 : vector<1x4x256xf32> to vector<4x256xf32>
      %28 = vector.shape_cast %24 : vector<4x256xf32> to vector<1x4x256xf32>
      tpu.vector_store %arg5[%25, %c0_7, %c0_8], %28 {strides = array<i32>} : memref<1x4x256xf32, #tpu.memory_space<vmem>>, vector<1x4x256xf32>,
      %c1_i32_9 = arith.constant 1 : i32
    } else {
    }
    return
  }
  func.func @transform_0(%arg0: i32, %arg1: i32, %arg2: memref<2xi32, #tpu.memory_space<smem>>) -> (i32, i32, i32) {
    %c0_i32 = arith.constant 0 : i32
    %c0_i32_0 = arith.constant 0 : i32
    %c0_i32_1 = arith.constant 0 : i32
    return %arg0, %c0_i32, %c0_i32_0 : i32, i32, i32
  }
  func.func @transform_1(%arg0: i32, %arg1: i32, %arg2: memref<2xi32, #tpu.memory_space<smem>>) -> (i32, i32, i32) {
    %c0_i32 = arith.constant 0 : i32
    %c0_i32_0 = arith.constant 0 : i32
    %c0_i32_1 = arith.constant 0 : i32
    return %arg0, %c0_i32, %c0_i32_0 : i32, i32, i32
  }
  func.func @transform_2(%arg0: i32, %arg1: i32, %arg2: memref<2xi32, #tpu.memory_space<smem>>) -> (i32, i32, i32) {
    %c0_i32 = arith.constant 0 : i32
    %c0_i32_0 = arith.constant 0 : i32
    return %arg0, %c0_i32, %arg1 : i32, i32, i32
  }
}

</mosaic_0001>

<bundles_post_ra>
// kernel: tpu_custom_call.1
= control target key start
LH: loop header
LB: loop body
LE: loop exit
PB: predicated region body
PF: predicated region fallthrough
CT: control target
= control target key end

     0   :  { %s979_s15 = smov [#allocation3]   ;;  %s1279_s0 = inlined_call_operand.hbm [shape: s32[2], index: 0, kind: input, shape index: {}]   ;;  %s1280_s1 = inlined_call_operand.hbm [shape: f32[2,4,8], index: 1, kind: input, shape index: {}]   ;;  %s1281_s2 = inlined_call_operand.hbm [shape: s32[2,1,8], index: 2, kind: input, shape index: {}]   ;;  %s1282_s3 = inlined_call_operand.hbm [shape: f32[2,4,256], index: 3, kind: output, shape index: {}]  }
   0x1   :  { %s9_s14 = sshll.u32 %s1279_s0, 4  ;;  %s10_s14 = int_to_ptr.hbm [resolvable:$true] %s9_s14 }
   0x2   :  { %12 = dma.hbm_to_smem %s10_s14, 16, %s979_s15, [#allocation2] }
   0x3   :  { %941 = dma.done.wait [#allocation2], 16 }
   0x4   :  { %942 = vsyncadd [#allocation2], 4294967280 }
   0x5   :  { %15 = sfence }
   0x6   :  { %16 = vsyncpa [#allocation5], 0 }
   0x7   :  { %18 = vsyncpa [#allocation5 + $0x1], 0 }
   0x8   :  { %19 = vsyncpa [#allocation8], 0 }
   0x9   :  { %21 = vsyncpa [#allocation8 + $0x1], 0 }
   0xa   :  { %22 = vsyncpa [#allocation6], 0 }
   0xb   :  { %24 = vsyncpa [#allocation6 + $0x1], 0  ;;  %s1005_s16 = smov 0   ;;  %s1007_s17 = smov 0  }
   0xc   :  { %s1009_s18 = smov 0   ;;  %s1011_s19 = smov 0  }
   0xd   :  { %s1013_s0 = smov 0   ;;  %s1015_s20 = smov 0  }
   0xe LB: > { %s663_s21 = sadd.s32 4294967295, %s977_s20   ;;  %s664_s22 = sadd.s32 4294967294, %s977_s20   ;;  %s977_s20 = sphi %s1015_s20, %s30_s20   ;;  %s973_s0 = sphi %s1013_s0, %s1291_s0   ;;  %s969_s19 = sphi %s1011_s19, %s1290_s19   ;;  %s965_s18 = sphi %s1009_s18, %s1289_s18   ;;  %s961_s17 = sphi %s1007_s17, %s1288_s17   ;;  %s957_s16 = sphi %s1005_s16, %s1287_s16  }
   0xf   : > { %s42_s23 = sadd.s32 1, %s973_s0  ;;  %s49_s24 = sadd.s32 1, %s965_s18 }
  0x10   : > { %p44_p0 = scmp.ge.s32.totalorder %s42_s23, 2  ;;  %p56_p1 = scmp.ne.s32.totalorder %s965_s18, %s961_s17 }
  0x11   : > { %p57_p2 = scmp.eq.s32.totalorder %s977_s20, 0  ;;  %p62_p3 = scmp.ne.s32.totalorder %s961_s17, %s957_s16 }
  0x12   : > { %s1293_s23 = smov (%p44_p0, %s42_s23), 0  ;;  %p63_p5 = scmp.eq.s32.totalorder %s663_s21, 0 }
  0x13   : > { %p1046_p4 = por %p57_p2, %p56_p1  ;;  %s46_s26 = ssub.s32 %s973_s0, %s1293_s23 }
  0x14   : > { %p114_p6 = scmp.eq.s32.totalorder %s663_s21, 1  ;;  %p47_p7 = scmp.eq.s32.totalorder %s46_s26, 0 }
  0x15   : > { %p1052_p8 = por %p63_p5, %p62_p3  ;;  %p120_p10 = scmp.eq.s32.totalorder %s664_s22, 1 }
  0x16   : > { %p1056_p9 = por %p114_p6, %p56_p1  ;;  %p666_p12 = scmp.ge.s32.totalorder %s977_s20, 2 }
  0x17   : > { %s1061_s29 = scalar_select %p47_p7, %s965_s18, %s49_s24  }
  0x18   : > { %p1063_p11 = por %p120_p10, %p62_p3  ;;  %p763_p13 = scmp.lt.s32.totalorder %s977_s20, 2 }
  0x19   : > { %s140_s4 = sand.u32 1, %s965_s18   ;;  %s668_s6 = sshll.u32 %s973_s0, 2 }
  0x1a   : > { %s667_s5 = sshll.u32 %s140_s4, 2  ;;  %s148_s9 = scalar_lea.hbm %s1280_s1, %s668_s6 }
  0x1b   : > { %s144_s10 = scalar_lea.vmem [#allocation4], %s667_s5  ;;  %s150_s12 = sshll.u32 %s148_s9, 4  ;;  %s151_s12 = int_to_ptr.hbm [resolvable:$true] %s150_s12 }
  0x1c   : > { %s152_s11 = sshll.u32 %s144_s10, 4  ;;  %p753_p0 = pnand %p763_p13, %p1046_p4  ;;  %s153_s11 = int_to_ptr.vmem [resolvable:$true] %s152_s11 }
  0x1d   : > { %p669_p1 = scmp.ge.s32.totalorder %s977_s20, 1  ;;  %p174_p2 = scmp.lt.s32.totalorder %s977_s20, 3 }
  0x1e   : > { %s141_s13 = scalar_lea.sflag [#allocation5], %s140_s4  ;;  %s165_s21 = scalar_lea.hbm %s1281_s2, %s973_s0 }
  0x1f   : > { %755 = dma.hbm_to_vmem [thread:$0]  (!%p753_p0), %s151_s12, 64, %s153_s11, %s141_s13  }
  0x20   : > { %p175_p3 = pnand %p669_p1, %p174_p2  ;;  %s162_s22 = scalar_lea.vmem [#allocation7], %s140_s4 }
  0x21   : > { %s169_s24 = sshll.u32 %s162_s22, 4  ;;  %s167_s26 = sshll.u32 %s165_s21, 4  ;;  %s170_s24 = int_to_ptr.vmem [resolvable:$true] %s169_s24  ;;  %s168_s26 = int_to_ptr.hbm [resolvable:$true] %s167_s26 }
  0x22   : > { %s160_s5 = scalar_lea.sflag [#allocation8], %s140_s4  ;;  %178 = sbr.rel (%p175_p3) target bundleno = 280 (0x118), region = 28 }
  0x23   : > { %758 = dma.hbm_to_vmem [thread:$0]  (!%p753_p0), %s168_s26, 16, %s170_s24, %s160_s5  }
  0x24   : > { %s1083_s25 = sand.u32 (!%p175_p3), 1, %s961_s17  }
  0x25   : > { %s670_s6 = sshll.u32 (!%p175_p3), %s1083_s25, 2  ;;  %s181_s7 = scalar_lea.sflag (!%p175_p3), [#allocation5], %s1083_s25 }
  0x26   : > { %s1087_s8 = scalar_lea.vmem (!%p175_p3), [#allocation4], %s670_s6 }
  0x27   : > { %944 = dma.done.wait (%p1052_p8), %s181_s7, 64  }
  0x28   : > { %946 = vsyncadd (%p1052_p8), %s181_s7, 4294967232  ;;  %s191_s4 = scalar_lea.sflag [#allocation8], %s1083_s25  ;;  %s193_s9 = scalar_lea.vmem [#allocation7], %s1083_s25 }
  0x29   : > { %948 = dma.done.wait (%p1052_p8), %s191_s4, 16  }
  0x2a   : > { %950 = vsyncadd (%p1052_p8), %s191_s4, 4294967280  ;;  %s671_s10 = sshll.u32 %s1083_s25, 3  ;;  %s221_s11 = sld [smem:[#allocation3 + %s969_s19]] }
  0x2b   : > { %s1101_s12 = scalar_lea.vmem [#allocation9], %s671_s10 }
  0x30   : > { %p672_p4 = scmp.ne.s32.totalorder %s221_s11, 0 }
  0x32   : > { %225 = sbr.rel (%p672_p4) target bundleno = 57 (0x39), region = 40 }
  0x37   : > { %v980_v0 = vmov 0.0  }
  0x38   : > { %226 = vst [vmem:[%s1101_s12] sm:$0xff] %v980_v0 }
  0x39 PF: > { %p673_p5 = scmp.le.s32.totalorder %s221_s11, 0 }
  0x3b   : > { %230 = sbr.rel (%p673_p5) target bundleno = 265 (0x109), region = 44 }
  0x40   : > { %v232_v1 = vlaneseq  ;;  %v1106_v3 = vld [vmem:[%s193_s9] ss:$0 sm:$0xff]  ;;  %vm397_vm0 = vcmask 64512   ;;  %v981_v10 = vmov 0.0  }
  0x42   : > { %v1104_v2 = vshrl.u32 %v232_v1, 7 }
  0x44   : > { %v264_v4 = vadd.s32 248, %v1104_v2  ;;  %v248_v5 = vadd.s32 120, %v1104_v2  ;;  %v263_v6 = vadd.s32 240, %v1104_v2  ;;  %v247_v7 = vadd.s32 112, %v1104_v2 }
  0x45   : > { %v262_v8 = vadd.s32 232, %v1104_v2  ;;  %v246_v9 = vadd.s32 104, %v1104_v2  ;;  %v261_v15 = vadd.s32 224, %v1104_v2  ;;  %v245_v16 = vadd.s32 96, %v1104_v2 }
  0x46   : > { %vm331_vm1 = vcmp.eq.s32.totalorder %v264_v4, %v1106_v3  ;;  %vm315_vm2 = vcmp.eq.s32.totalorder %v248_v5, %v1106_v3  ;;  %vm330_vm3 = vcmp.eq.s32.totalorder %v263_v6, %v1106_v3  ;;  %vm314_vm4 = vcmp.eq.s32.totalorder %v247_v7, %v1106_v3  ;;  %v396_v6 = vld [vmem:[%s1087_s8] sm:$0xf] }
  0x47   : > { %v705_v11 = vsel %vm331_vm1, 1.0, %v981_v10  ;;  %v689_v12 = vsel %vm315_vm2, 1.0, %v981_v10  ;;  %v704_v13 = vsel %vm330_vm3, 1.0, %v981_v10  ;;  %v688_v14 = vsel %vm314_vm4, 1.0, %v981_v10 }
  0x48   : > { %723 = vmatpush.xpose.msk.msra.mxu1 %vm397_vm0, %v705_v11  ;;  %706 = vmatpush.xpose.msk.msra.mxu0 %vm397_vm0, %v689_v12  ;;  %vm329_vm5 = vcmp.eq.s32.totalorder %v262_v8, %v1106_v3  ;;  %vm313_vm6 = vcmp.eq.s32.totalorder %v246_v9, %v1106_v3  ;;  %vm328_vm7 = vcmp.eq.s32.totalorder %v261_v15, %v1106_v3  ;;  %v260_v19 = vadd.s32 216, %v1104_v2 }
  0x49   : > { %v703_v17 = vsel %vm329_vm5, 1.0, %v981_v10  ;;  %v687_v18 = vsel %vm313_vm6, 1.0, %v981_v10  ;;  %vm312_vm8 = vcmp.eq.s32.totalorder %v245_v16, %v1106_v3  ;;  %v244_v20 = vadd.s32 88, %v1104_v2 }
  0x4a   : > { %v702_v21 = vsel %vm328_vm7, 1.0, %v981_v10  ;;  %v686_v22 = vsel %vm312_vm8, 1.0, %v981_v10  ;;  %vm327_vm9 = vcmp.eq.s32.totalorder %v260_v19, %v1106_v3  ;;  %v259_v23 = vadd.s32 208, %v1104_v2 }
  0x4b   : > { %vm311_vm10 = vcmp.eq.s32.totalorder %v244_v20, %v1106_v3  ;;  %v243_v24 = vadd.s32 80, %v1104_v2  ;;  %v701_v25 = vsel %vm327_vm9, 1.0, %v981_v10  ;;  %v258_v27 = vadd.s32 200, %v1104_v2 }
  0x4c   : > { %724 = vmatpush.xpose.msk.msra.mxu1 %vm397_vm0, %v704_v13  ;;  %707 = vmatpush.xpose.msk.msra.mxu0 %vm397_vm0, %v688_v14  ;;  %v685_v26 = vsel %vm311_vm10, 1.0, %v981_v10  ;;  %vm326_vm11 = vcmp.eq.s32.totalorder %v259_v23, %v1106_v3  ;;  %v242_v28 = vadd.s32 72, %v1104_v2  ;;  %v257_v31 = vadd.s32 192, %v1104_v2 }
  0x4d   : > { %vm310_vm12 = vcmp.eq.s32.totalorder %v243_v24, %v1106_v3  ;;  %v700_v29 = vsel %vm326_vm11, 1.0, %v981_v10  ;;  %vm325_vm13 = vcmp.eq.s32.totalorder %v258_v27, %v1106_v3  ;;  %v241_v32 = vadd.s32 64, %v1104_v2 }
  0x4e   : > { %v684_v30 = vsel %vm310_vm12, 1.0, %v981_v10  ;;  %vm309_vm14 = vcmp.eq.s32.totalorder %v242_v28, %v1106_v3  ;;  %v699_v33 = vsel %vm325_vm13, 1.0, %v981_v10  ;;  %vm324_vm15 = vcmp.eq.s32.totalorder %v257_v31, %v1106_v3 }
  0x4f   : > { %v683_v34 = vsel %vm309_vm14, 1.0, %v981_v10  ;;  %vm308_vm1 = vcmp.eq.s32.totalorder %v241_v32, %v1106_v3  ;;  %v256_v35 = vadd.s32 184, %v1104_v2  ;;  %v240_v36 = vadd.s32 56, %v1104_v2 }
  0x50   : > { %725 = vmatpush.xpose.msk.msra.mxu1 %vm397_vm0, %v703_v17  ;;  %708 = vmatpush.xpose.msk.msra.mxu0 %vm397_vm0, %v687_v18  ;;  %v698_v37 = vsel %vm324_vm15, 1.0, %v981_v10  ;;  %v682_v38 = vsel %vm308_vm1, 1.0, %v981_v10  ;;  %v255_v39 = vadd.s32 176, %v1104_v2  ;;  %v239_v40 = vadd.s32 48, %v1104_v2 }
  0x51   : > { %vm323_vm2 = vcmp.eq.s32.totalorder %v256_v35, %v1106_v3  ;;  %vm307_vm3 = vcmp.eq.s32.totalorder %v240_v36, %v1106_v3  ;;  %v254_v43 = vadd.s32 168, %v1104_v2  ;;  %v238_v44 = vadd.s32 40, %v1104_v2 }
  0x52   : > { %v697_v41 = vsel %vm323_vm2, 1.0, %v981_v10  ;;  %v681_v42 = vsel %vm307_vm3, 1.0, %v981_v10  ;;  %vm322_vm4 = vcmp.eq.s32.totalorder %v255_v39, %v1106_v3  ;;  %vm306_vm5 = vcmp.eq.s32.totalorder %v239_v40, %v1106_v3 }
  0x53   : > { %v696_v45 = vsel %vm322_vm4, 1.0, %v981_v10  ;;  %v680_v46 = vsel %vm306_vm5, 1.0, %v981_v10  ;;  %vm321_vm6 = vcmp.eq.s32.totalorder %v254_v43, %v1106_v3  ;;  %vm305_vm7 = vcmp.eq.s32.totalorder %v238_v44, %v1106_v3 }
  0x54   : > { %726 = vmatpush.xpose.msk.msra.mxu1 %vm397_vm0, %v702_v21  ;;  %709 = vmatpush.xpose.msk.msra.mxu0 %vm397_vm0, %v686_v22  ;;  %v253_v47 = vadd.s32 160, %v1104_v2  ;;  %v237_v48 = vadd.s32 32, %v1104_v2  ;;  %v695_v49 = vsel %vm321_vm6, 1.0, %v981_v10  ;;  %v679_v50 = vsel %vm305_vm7, 1.0, %v981_v10 }
  0x55   : > { %v252_v51 = vadd.s32 152, %v1104_v2  ;;  %v236_v52 = vadd.s32 24, %v1104_v2  ;;  %v251_v55 = vadd.s32 144, %v1104_v2  ;;  %v235_v56 = vadd.s32 16, %v1104_v2 }
  0x56   : > { %vm320_vm8 = vcmp.eq.s32.totalorder %v253_v47, %v1106_v3  ;;  %vm304_vm9 = vcmp.eq.s32.totalorder %v237_v48, %v1106_v3  ;;  %v250_v59 = vadd.s32 136, %v1104_v2  ;;  %v234_v60 = vadd.s32 8, %v1104_v2 }
  0x57   : > { %v694_v53 = vsel %vm320_vm8, 1.0, %v981_v10  ;;  %v678_v54 = vsel %vm304_vm9, 1.0, %v981_v10  ;;  %vm319_vm10 = vcmp.eq.s32.totalorder %v252_v51, %v1106_v3  ;;  %vm303_vm11 = vcmp.eq.s32.totalorder %v236_v52, %v1106_v3 }
  0x58   : > { %727 = vmatpush.xpose.msk.msra.mxu1 %vm397_vm0, %v701_v25  ;;  %710 = vmatpush.xpose.msk.msra.mxu0 %vm397_vm0, %v685_v26  ;;  %v693_v57 = vsel %vm319_vm10, 1.0, %v981_v10  ;;  %v677_v58 = vsel %vm303_vm11, 1.0, %v981_v10  ;;  %vm318_vm12 = vcmp.eq.s32.totalorder %v251_v55, %v1106_v3  ;;  %vm302_vm13 = vcmp.eq.s32.totalorder %v235_v56, %v1106_v3 }
  0x59   : > { %v692_v61 = vsel %vm318_vm12, 1.0, %v981_v10  ;;  %v676_v62 = vsel %vm302_vm13, 1.0, %v981_v10  ;;  %vm317_vm14 = vcmp.eq.s32.totalorder %v250_v59, %v1106_v3  ;;  %vm301_vm15 = vcmp.eq.s32.totalorder %v234_v60, %v1106_v3 }
  0x5a   : > { %v249_v63 = vadd.s32 128, %v1104_v2  ;;  %v691_v0 = vsel %vm317_vm14, 1.0, %v981_v10  ;;  %v675_v1 = vsel %vm301_vm15, 1.0, %v981_v10  ;;  %vm300_vm2 = vcmp.eq.s32.totalorder %v1104_v2, %v1106_v3 }
  0x5b   : > { %v674_v5 = vsel %vm300_vm2, 1.0, %v981_v10  ;;  %vm540_vm3 = vcmask 1043456  }
  0x5c   : > { %728 = vmatpush.xpose.msk.msra.mxu1 %vm397_vm0, %v700_v29  ;;  %711 = vmatpush.xpose.msk.msra.mxu0 %vm397_vm0, %v684_v30  ;;  %vm316_vm1 = vcmp.eq.s32.totalorder %v249_v63, %v1106_v3 }
  0x5d   : > { %v690_v4 = vsel %vm316_vm1, 1.0, %v981_v10 }
  0x60   : > { %729 = vmatpush.xpose.msk.msra.mxu1 %vm397_vm0, %v699_v33  ;;  %712 = vmatpush.xpose.msk.msra.mxu0 %vm397_vm0, %v683_v34 }
  0x64   : > { %730 = vmatpush.xpose.msk.msra.mxu1 %vm397_vm0, %v698_v37  ;;  %713 = vmatpush.xpose.msk.msra.mxu0 %vm397_vm0, %v682_v38 }
  0x68   : > { %731 = vmatpush.xpose.msk.msra.mxu1 %vm397_vm0, %v697_v41  ;;  %714 = vmatpush.xpose.msk.msra.mxu0 %vm397_vm0, %v681_v42 }
  0x6c   : > { %732 = vmatpush.xpose.msk.msra.mxu1 %vm397_vm0, %v696_v45  ;;  %715 = vmatpush.xpose.msk.msra.mxu0 %vm397_vm0, %v680_v46 }
  0x70   : > { %733 = vmatpush.xpose.msk.msra.mxu1 %vm397_vm0, %v695_v49  ;;  %716 = vmatpush.xpose.msk.msra.mxu0 %vm397_vm0, %v679_v50 }
  0x74   : > { %734 = vmatpush.xpose.msk.msra.mxu1 %vm397_vm0, %v694_v53  ;;  %717 = vmatpush.xpose.msk.msra.mxu0 %vm397_vm0, %v678_v54 }
  0x78   : > { %735 = vmatpush.xpose.msk.msra.mxu1 %vm397_vm0, %v693_v57  ;;  %718 = vmatpush.xpose.msk.msra.mxu0 %vm397_vm0, %v677_v58 }
  0x7c   : > { %736 = vmatpush.xpose.msk.msra.mxu1 %vm397_vm0, %v692_v61  ;;  %719 = vmatpush.xpose.msk.msra.mxu0 %vm397_vm0, %v676_v62 }
  0x80   : > { %737 = vmatpush.xpose.msk.msra.mxu1 %vm397_vm0, %v691_v0  ;;  %720 = vmatpush.xpose.msk.msra.mxu0 %vm397_vm0, %v675_v1 }
  0x84   : > { %738 = vmatpush.xpose.msk.msra.mxu1 %vm397_vm0, %v690_v4  ;;  %721 = vmatpush.xpose.msk.msra.mxu0 %vm397_vm0, %v674_v5 }
  0x87   : > { %739 = vmatmul.msk.f32.vlgmr.msra.gmra.mxu1 %vm397_vm0, %v396_v6  ;;  %722 = vmatmul.msk.f32.vlgmr.msra.gmra.mxu0 %vm397_vm0, %v396_v6 }
 0x104   : > { %v534_v7 = vpop.f32.mrf.mxu1  ;;  %v514_v8 = vpop.f32.mrf.mxu0 }
 0x105   : > { %v539_v2 = vrot.slane %v534_v7, 4 }
 0x107   : > { %v541_v3 = vsel %vm540_vm3, %v514_v8, %v539_v2 }
 0x108   : > { %543 = vst [vmem:[%s1101_s12] sm:$0xff] %v541_v3 }
 0x109 PF: > { %s745_s27 = sshll.u32 %s969_s19, 3  ;;  %s560_s21 = sshll.u32 %s1101_s12, 4  ;;  %s561_s21 = int_to_ptr.vmem [resolvable:$true] %s560_s21 }
 0x10a   : > { %s558_s15 = scalar_lea.hbm %s1282_s3, %s745_s27  ;;  %s545_s24 = scalar_lea.sflag [#allocation6], %s1083_s25 }
 0x10b   : > { %s562_s22 = sshll.u32 %s558_s15, 4  ;;  %s909_s19 = scalar_lea.hbm %s1282_s3, 16  ;;  %s563_s22 = int_to_ptr.hbm [resolvable:$true] %s562_s22 }
 0x10c   : > { %s903_s26 = sshra.s32 %s563_s22, 4  ;;  %s904_s26 = int_to_ptr.hbm [resolvable:$true] %s903_s26 }
 0x10d   : > { %s905_s5 = scalar_lea.hbm %s904_s26, 8  ;;  %p910_p10 = scmp.lt.s32.totalorder %s904_s26, %s1282_s3 }
 0x10e   : > { %p906_p6 = scmp.ne.s32.totalorder %s904_s26, %s905_s5  ;;  %p911_p13 = scmp.lt.s32.totalorder %s909_s19, %s905_s5 }
 0x110   : > { %p907_p7 = pnand %p906_p6, %p1056_p9  ;;  %p912_p0 = por %p911_p13, %p910_p10 }
 0x112   : > { %p908_p8 = pneg %p907_p7 }
 0x114   : > { %p913_p1 = pnand %p912_p0, %p908_p8 }
 0x116   : > { %916 = shalt.err (!%p913_p1)
}
 0x117   : > { %750 = dma.vmem_to_hbm [thread:$0]  (%p1056_p9), %s561_s21, 128, %s563_s22, %s545_s24  }
 0x118 PF: > { %s574_s25 = sand.u32 1, %s957_s16   ;;  %p760_p2 = pnand %p666_p12, %p1063_p11 }
 0x119   : > { %s575_s9 = scalar_lea.sflag [#allocation6], %s574_s25 }
 0x11a   : > { %p761_p3 = pneg %p760_p2 }
 0x11c   : > { %952 = dma.done.wait (%p761_p3), %s575_s9, 128  }
 0x11d   : > { %954 = vsyncadd (%p761_p3), %s575_s9, 4294967168  ;;  %s30_s20 = sadd.s32 1, %s977_s20   ;;  %s1287_s16 = smov %s961_s17 }
 0x11e   : > { %p27_p4 = scmp.ge.s32.totalorder %s30_s20, 4   ;;  %s1288_s17 = smov %s965_s18 }
 0x11f   : > { %s1289_s18 = smov %s1061_s29  ;;  %s1290_s19 = smov %s973_s0 }
 0x120   : > { %s1291_s0 = smov %s1293_s23  ;;  %29 = sbr.rel (!%p27_p4) target bundleno = 14 (0xe), region = 94 }
 0x125   :  { %581 = vsyncpa [#allocation5], 1 }
 0x126   :  { %583 = vsyncpa [#allocation5 + $0x1], 1 }
 0x127   :  { %584 = vsyncpa [#allocation8], 1 }
 0x128   :  { %586 = vsyncpa [#allocation8 + $0x1], 1 }
 0x129   :  { %587 = vsyncpa [#allocation6], 1 }
 0x12a   :  { %589 = vsyncpa [#allocation6 + $0x1], 1 }

</bundles_post_ra>
